<compile_context>
chip_gen: v5e
topology: v5e:2x2
jax: 0.10.0
libtpu: 0.0.40
codegen_flags: <defaults>
</compile_context>

<pallas_src>
import numpy as np
import jax
import jax.numpy as jnp
from jax.experimental import pallas as pl
from jax.experimental.pallas import tpu as pltpu

# ---------------- configuration -------------------------------------------
B, L, M = 2, 16, 4          # batch, seq_len, num_series
PATCH_SIZE = 4
STRIDE = 4
PATCH_NUM = (L - PATCH_SIZE) // STRIDE + 1 + 1   # +1 for replication padding
D_MODEL = 32
PRED_LEN = 8
EPS = 1e-5


# ---------------- single fused kernel ---------------------------------------
def fused_kernel(x_ref, w_ref, b_ref, out_ref):
    """Fused instance-norm + patchify + (in_layer∘out_layer) + de-norm.

    x_ref  : (B, L, M)       raw input series
    w_ref  : (PRED_LEN, L)   folded weight (patchify ∘ in_layer ∘ out_layer)^T
    b_ref  : (PRED_LEN, 1)   folded bias
    out_ref: (B, PRED_LEN, M)
    """
    w_t = w_ref[...]                                      # (PRED_LEN, L)
    bias = b_ref[...]                                     # (PRED_LEN, 1)
    for b in range(B):                                    # B tiny & static -> unrolled
        xb = x_ref[b]                                     # (L, M)
        mean = jnp.mean(xb, axis=0, keepdims=True)        # (1, M)
        xc = xb - mean
        var = jnp.mean(xc * xc, axis=0, keepdims=True)    # biased (unbiased=False)
        std = jnp.sqrt(var + EPS)
        xn = xc / std                                     # (L, M)
        # one MXU push replaces in_layer + out_layer + patch gather
        core = jnp.dot(w_t, xn, preferred_element_type=jnp.float32)   # (PRED_LEN, M)
        out_ref[b] = (core + bias) * std + mean           # de-normalize in place


def t54ts_forward(x, folded_params):
    w_eff_t, b_col = folded_params
    vmem = pl.BlockSpec(memory_space=pltpu.MemorySpace.VMEM)
    return pl.pallas_call(
        fused_kernel,
        in_specs=[vmem, vmem, vmem],
        out_specs=vmem,
        out_shape=jax.ShapeDtypeStruct((B, PRED_LEN, M), jnp.float32),
    )(x, w_eff_t, b_col)


# ---------------- offline parameter folding (exact, no nonlinearity) --------
def fold_params(w_in, b_in, w_out, b_out):
    """Fold in_layer∘out_layer and the replication-pad/unfold gather into a
    single (PRED_LEN, L) weight and (PRED_LEN, 1) bias.

      out = (patches_flat @ W_in_blockdiag) @ W_out + b_in-term + b_out
          = x_padded @ W_comb + b_comb
      and padded positions replicate x[L-1], so their W_comb rows fold onto
      time step L-1, giving W_eff of shape (L, PRED_LEN).
    """
    w_out_r = w_out.reshape(PATCH_NUM, D_MODEL, PRED_LEN)
    # per-patch combined weight: (PATCH_NUM, PATCH_SIZE, PRED_LEN)
    w_comb = jnp.einsum('pd,ndq->npq', w_in, w_out_r)
    w_comb = w_comb.reshape(PATCH_NUM * PATCH_SIZE, PRED_LEN)
    b_comb = b_out.reshape(-1) + b_in.reshape(-1) @ w_out_r.sum(axis=0)

    # padded-series position each (patch n, offset p) reads; pad values are
    # replications of x[L-1] -> scatter-add those rows onto time step L-1.
    idx = (np.arange(PATCH_NUM)[:, None] * STRIDE
           + np.arange(PATCH_SIZE)[None, :]).reshape(-1)
    idx = np.minimum(idx, L - 1)
    w_eff = jnp.zeros((L, PRED_LEN), jnp.float32).at[jnp.asarray(idx)].add(w_comb)
    return w_eff.T, b_comb.reshape(PRED_LEN, 1)


# ---------------- pure-JAX reference (mirrors the PyTorch module) -----------
def reference_forward(x, params):
    w_in, b_in, w_out, b_out = params
    means = jnp.mean(x, axis=1, keepdims=True)
    xc = x - means
    stdev = jnp.sqrt(jnp.mean(xc * xc, axis=1, keepdims=True) + EPS)
    xn = xc / stdev
    x_t = jnp.transpose(xn, (0, 2, 1))                                  # (B, M, L)
    x_pad = jnp.concatenate(
        [x_t, jnp.repeat(x_t[..., -1:], STRIDE, axis=-1)], axis=-1)     # ReplicationPad1d
    patches = jnp.stack(
        [x_pad[..., i * STRIDE:i * STRIDE + PATCH_SIZE]
         for i in range(PATCH_NUM)], axis=2).reshape(B * M, PATCH_NUM, PATCH_SIZE)
    h = jnp.einsum('bnp,pd->bnd', patches, w_in) + b_in.reshape(-1)     # in_layer
    out = h.reshape(B * M, PATCH_NUM * D_MODEL) @ w_out + b_out.reshape(-1)  # out_layer
    out = out.reshape(B, M, PRED_LEN).transpose(0, 2, 1)                # (b m) l -> b l m
    return out * stdev + means


# ---------------- main ------------------------------------------------------
if __name__ == "__main__":
    key = jax.random.PRNGKey(0)
    k_x, k_wi, k_bi, k_wo, k_bo = jax.random.split(key, 5)

    x = jax.random.normal(k_x, (B, L, M), dtype=jnp.float32)

    # deterministic parameter init (Linear stored as (in, out))
    w_in = jax.random.normal(k_wi, (PATCH_SIZE, D_MODEL), jnp.float32) * 0.1
    b_in = jax.random.normal(k_bi, (1, D_MODEL), jnp.float32) * 0.1
    w_out = jax.random.normal(
        k_wo, (D_MODEL * PATCH_NUM, PRED_LEN), jnp.float32) * 0.1
    b_out = jax.random.normal(k_bo, (1, PRED_LEN), jnp.float32) * 0.1
    params = (w_in, b_in, w_out, b_out)

    # one-time offline fold (mathematically exact; ~1e-6 fp-order difference)
    folded = jax.tree_util.tree_map(
        jax.block_until_ready, fold_params(w_in, b_in, w_out, b_out))

    out = jax.block_until_ready(t54ts_forward(x, folded))
    ref = jax.block_until_ready(reference_forward(x, params))

    assert out.shape == (B, PRED_LEN, M), out.shape
    assert jnp.allclose(out, ref, atol=1e-4, rtol=1e-4), \
        float(jnp.max(jnp.abs(out - ref)))
    print("KERNEL_OK")
</pallas_src>

<mosaic_0001>
module attributes {stable_mosaic.version = 11 : i64} {
  func.func @fused_kernel(%arg0: memref<2x16x4xf32, #tpu.memory_space<vmem>>, %arg1: memref<8x16xf32, #tpu.memory_space<vmem>>, %arg2: memref<8x1xf32, #tpu.memory_space<vmem>>, %arg3: memref<2x8x4xf32, #tpu.memory_space<vmem>>) attributes {dimension_semantics = [], scalar_prefetch = 0 : i64, scratch_operands = 0 : i64, tpu.core_type = #tpu.core_type<tc>} {
    %c0 = arith.constant 0 : index
    %c0_0 = arith.constant 0 : index
    %0 = vector.load %arg1[%c0, %c0_0] : memref<8x16xf32, #tpu.memory_space<vmem>>, vector<8x16xf32>
    %c0_1 = arith.constant 0 : index
    %c0_2 = arith.constant 0 : index
    %1 = vector.load %arg2[%c0_1, %c0_2] : memref<8x1xf32, #tpu.memory_space<vmem>>, vector<8x1xf32>
    %c0_3 = arith.constant 0 : index
    %c0_4 = arith.constant 0 : index
    %c0_5 = arith.constant 0 : index
    %2 = vector.load %arg0[%c0_3, %c0_4, %c0_5] : memref<2x16x4xf32, #tpu.memory_space<vmem>>, vector<1x16x4xf32>
    %3 = vector.shape_cast %2 : vector<1x16x4xf32> to vector<16x4xf32>
    %cst = arith.constant dense<0.000000e+00> : vector<4xf32>
    %4 = vector.multi_reduction <add>, %3, %cst [0] : vector<16x4xf32> to vector<4xf32>
    %5 = vector.shape_cast %4 : vector<4xf32> to vector<1x4xf32>
    %cst_6 = arith.constant 1.600000e+01 : f32
    %6 = vector.broadcast %cst_6 : f32 to vector<1x4xf32>
    %7 = arith.divf %5, %6 : vector<1x4xf32>
    %8 = vector.broadcast %7 : vector<1x4xf32> to vector<16x4xf32>
    %9 = arith.subf %3, %8 : vector<16x4xf32>
    %10 = arith.mulf %9, %9 : vector<16x4xf32>
    %cst_7 = arith.constant dense<0.000000e+00> : vector<4xf32>
    %11 = vector.multi_reduction <add>, %10, %cst_7 [0] : vector<16x4xf32> to vector<4xf32>
    %12 = vector.shape_cast %11 : vector<4xf32> to vector<1x4xf32>
    %cst_8 = arith.constant 1.600000e+01 : f32
    %13 = vector.broadcast %cst_8 : f32 to vector<1x4xf32>
    %14 = arith.divf %12, %13 : vector<1x4xf32>
    %cst_9 = arith.constant 9.99999974E-6 : f32
    %15 = vector.broadcast %cst_9 : f32 to vector<1x4xf32>
    %16 = arith.addf %14, %15 : vector<1x4xf32>
    %17 = math.sqrt %16 : vector<1x4xf32>
    %18 = vector.broadcast %17 : vector<1x4xf32> to vector<16x4xf32>
    %19 = arith.divf %9, %18 : vector<16x4xf32>
    %cst_10 = arith.constant dense<0.000000e+00> : vector<8x4xf32>
    %20 = tpu.matmul %0, %19, %cst_10 {dimension_numbers = #tpu.dot_dimension_numbers<[1], [0], [0], [1], [0, 0, 1, 1], [], []>} : vector<8x16xf32>, vector<16x4xf32>, vector<8x4xf32> -> vector<8x4xf32>
    %21 = vector.broadcast %1 : vector<8x1xf32> to vector<8x4xf32>
    %22 = arith.addf %20, %21 : vector<8x4xf32>
    %23 = vector.broadcast %17 : vector<1x4xf32> to vector<8x4xf32>
    %24 = arith.mulf %22, %23 : vector<8x4xf32>
    %25 = vector.broadcast %7 : vector<1x4xf32> to vector<8x4xf32>
    %26 = arith.addf %24, %25 : vector<8x4xf32>
    %c0_11 = arith.constant 0 : index
    %c0_12 = arith.constant 0 : index
    %c0_13 = arith.constant 0 : index
    %27 = vector.load %arg3[%c0_11, %c0_12, %c0_13] : memref<2x8x4xf32, #tpu.memory_space<vmem>>, vector<1x8x4xf32>
    %28 = vector.shape_cast %27 : vector<1x8x4xf32> to vector<8x4xf32>
    %29 = vector.shape_cast %26 : vector<8x4xf32> to vector<1x8x4xf32>
    tpu.vector_store %arg3[%c0_11, %c0_12, %c0_13], %29 {strides = array<i32>} : memref<2x8x4xf32, #tpu.memory_space<vmem>>, vector<1x8x4xf32>,
    %c1 = arith.constant 1 : index
    %c0_14 = arith.constant 0 : index
    %c0_15 = arith.constant 0 : index
    %30 = vector.load %arg0[%c1, %c0_14, %c0_15] : memref<2x16x4xf32, #tpu.memory_space<vmem>>, vector<1x16x4xf32>
    %31 = vector.shape_cast %30 : vector<1x16x4xf32> to vector<16x4xf32>
    %cst_16 = arith.constant dense<0.000000e+00> : vector<4xf32>
    %32 = vector.multi_reduction <add>, %31, %cst_16 [0] : vector<16x4xf32> to vector<4xf32>
    %33 = vector.shape_cast %32 : vector<4xf32> to vector<1x4xf32>
    %cst_17 = arith.constant 1.600000e+01 : f32
    %34 = vector.broadcast %cst_17 : f32 to vector<1x4xf32>
    %35 = arith.divf %33, %34 : vector<1x4xf32>
    %36 = vector.broadcast %35 : vector<1x4xf32> to vector<16x4xf32>
    %37 = arith.subf %31, %36 : vector<16x4xf32>
    %38 = arith.mulf %37, %37 : vector<16x4xf32>
    %cst_18 = arith.constant dense<0.000000e+00> : vector<4xf32>
    %39 = vector.multi_reduction <add>, %38, %cst_18 [0] : vector<16x4xf32> to vector<4xf32>
    %40 = vector.shape_cast %39 : vector<4xf32> to vector<1x4xf32>
    %cst_19 = arith.constant 1.600000e+01 : f32
    %41 = vector.broadcast %cst_19 : f32 to vector<1x4xf32>
    %42 = arith.divf %40, %41 : vector<1x4xf32>
    %cst_20 = arith.constant 9.99999974E-6 : f32
    %43 = vector.broadcast %cst_20 : f32 to vector<1x4xf32>
    %44 = arith.addf %42, %43 : vector<1x4xf32>
    %45 = math.sqrt %44 : vector<1x4xf32>
    %46 = vector.broadcast %45 : vector<1x4xf32> to vector<16x4xf32>
    %47 = arith.divf %37, %46 : vector<16x4xf32>
    %cst_21 = arith.constant dense<0.000000e+00> : vector<8x4xf32>
    %48 = tpu.matmul %0, %47, %cst_21 {dimension_numbers = #tpu.dot_dimension_numbers<[1], [0], [0], [1], [0, 0, 1, 1], [], []>} : vector<8x16xf32>, vector<16x4xf32>, vector<8x4xf32> -> vector<8x4xf32>
    %49 = vector.broadcast %1 : vector<8x1xf32> to vector<8x4xf32>
    %50 = arith.addf %48, %49 : vector<8x4xf32>
    %51 = vector.broadcast %45 : vector<1x4xf32> to vector<8x4xf32>
    %52 = arith.mulf %50, %51 : vector<8x4xf32>
    %53 = vector.broadcast %35 : vector<1x4xf32> to vector<8x4xf32>
    %54 = arith.addf %52, %53 : vector<8x4xf32>
    %c1_22 = arith.constant 1 : index
    %c0_23 = arith.constant 0 : index
    %c0_24 = arith.constant 0 : index
    %55 = vector.load %arg3[%c1_22, %c0_23, %c0_24] : memref<2x8x4xf32, #tpu.memory_space<vmem>>, vector<1x8x4xf32>
    %56 = vector.shape_cast %55 : vector<1x8x4xf32> to vector<8x4xf32>
    %57 = vector.shape_cast %54 : vector<8x4xf32> to vector<1x8x4xf32>
    tpu.vector_store %arg3[%c1_22, %c0_23, %c0_24], %57 {strides = array<i32>} : memref<2x8x4xf32, #tpu.memory_space<vmem>>, vector<1x8x4xf32>,
    return
  }
}

</mosaic_0001>

<bundles_post_ra>
// kernel: tpu_custom_call.1
= control target key start
LH: loop header
LB: loop body
LE: loop exit
PB: predicated region body
PF: predicated region fallthrough
CT: control target
= control target key end

     0   :  { %vm18_vm0 = vcmask 31744   ;;  %v213_v2 = vmov 16.0   ;;  %vm84_vm14 = vcmask 130048   ;;  %s299_s0 = inlined_call_operand.vmem [shape: f32[2,16,4], index: 0, kind: input, shape index: {}]   ;;  %s300_s2 = inlined_call_operand.vmem [shape: f32[8,1], index: 2, kind: input, shape index: {}]   ;;  %s301_s1 = inlined_call_operand.vmem [shape: f32[8,16], index: 1, kind: input, shape index: {}]   ;;  %s302_s3 = inlined_call_operand.vmem [shape: f32[2,8,4], index: 3, kind: output, shape index: {}]  }
   0x1   :  { %v16_v0 = vld [vmem:[%s299_s0] sm:$0xff]  ;;  %v17_v1 = vld [vmem:[%s299_s0 + $0x8] sm:$0xff]  ;;  %203 = vrcp.f32 %v213_v2  ;;  %v196_v3 = vld [vmem:[%s299_s0 + $0x10] sm:$0xff] }
   0x2   :  { %v19_v4 = vsel %vm18_vm0, %v16_v0, 0.0  ;;  %v20_v5 = vsel %vm18_vm0, %v17_v1, 0.0  ;;  %v197_v6 = vld [vmem:[%s299_s0 + $0x18] sm:$0xff]  ;;  %v114_v7 = vsel %vm18_vm0, %v196_v3, 0.0 }
   0x3   :  { %v21_v8 = vadd.f32 %v20_v5, %v19_v4  ;;  %v115_v9 = vsel %vm18_vm0, %v197_v6, 0.0 }
   0x4   :  { %v116_v10 = vadd.f32 %v115_v9, %v114_v7 }
   0x5   :  { %v22_v11 = vrot.slane %v21_v8, 4 }
   0x6   :  { %v117_v12 = vrot.slane %v116_v10, 4 }
   0x7   :  { %v204_v13 = vpop.eup %203  ;;  %v23_v14 = vadd.f32 %v22_v11, %v21_v8  ;;  %v214_v8 = vmov 0  }
   0x8   :  { %v29_v15 = vmul.f32 16.0, %v204_v13  ;;  %v118_v16 = vadd.f32 %v117_v12, %v116_v10  ;;  %vm33_vm1 = vweird.f32 %v204_v13  ;;  %202 = vset.pattern.permute.xlu0 %v214_v8 }
   0x9   :  { %v24_v17 = vrot.slane %v23_v14, 2 }
   0xa   :  { %v30_v18 = vsub.f32 1.0, %v29_v15  ;;  %v119_v19 = vrot.slane %v118_v16, 2 }
   0xb   :  { %v25_v20 = vadd.f32 %v24_v17, %v23_v14 }
   0xc   :  { %v31_v21 = vmul.f32 %v204_v13, %v30_v18  ;;  %v120_v22 = vadd.f32 %v119_v19, %v118_v16 }
   0xd   :  { %v26_v23 = vrot.slane %v25_v20, 1 }
   0xe   :  { %v32_v24 = vadd.f32 %v204_v13, %v31_v21  ;;  %v121_v25 = vrot.slane %v120_v22, 1 }
   0xf   :  { %v27_v26 = vadd.f32 %v26_v23, %v25_v20 }
  0x10   :  { %v34_v27 = vsel %vm33_vm1, %v204_v13, %v32_v24  ;;  %v122_v28 = vadd.f32 %v121_v25, %v120_v22 }
  0x11   :  { %v251_v29 = vmul.f32 %v34_v27, %v27_v26 }
  0x12   :  { %v253_v30 = vmul.f32 %v122_v28, %v34_v27 }
  0x13   :  { %v256_v31 = vsub.f32 %v16_v0, %v251_v29  ;;  %v259_v32 = vsub.f32 %v17_v1, %v251_v29 }
  0x14   :  { %v262_v33 = vsub.f32 %v196_v3, %v253_v30  ;;  %v265_v34 = vsub.f32 %v197_v6, %v253_v30  ;;  %v15_v6 = vld [vmem:[%s300_s2] sm:$0xff] }
  0x15   :  { %v38_v35 = vmul.f32 %v256_v31, %v256_v31  ;;  %v39_v36 = vmul.f32 %v259_v32, %v259_v32  ;;  %81 = vperm.xlu0 %202, %v15_v6  }
  0x16   :  { %v126_v37 = vmul.f32 %v262_v33, %v262_v33  ;;  %v127_v38 = vmul.f32 %v265_v34, %v265_v34 }
  0x17   :  { %v40_v39 = vsel %vm18_vm0, %v38_v35, 0.0  ;;  %v41_v40 = vsel %vm18_vm0, %v39_v36, 0.0 }
  0x18   :  { %v42_v41 = vadd.f32 %v41_v40, %v40_v39  ;;  %v128_v42 = vsel %vm18_vm0, %v126_v37, 0.0  ;;  %v129_v43 = vsel %vm18_vm0, %v127_v38, 0.0 }
  0x19   :  { %v130_v44 = vadd.f32 %v129_v43, %v128_v42 }
  0x1a   :  { %v43_v45 = vrot.slane %v42_v41, 4 }
  0x1b   :  { %v131_v46 = vrot.slane %v130_v44, 4 }
  0x1c   :  { %v44_v47 = vadd.f32 %v43_v45, %v42_v41 }
  0x1d   :  { %v132_v48 = vadd.f32 %v131_v46, %v130_v44 }
  0x1e   :  { %v45_v49 = vrot.slane %v44_v47, 2 }
  0x1f   :  { %v133_v50 = vrot.slane %v132_v48, 2 }
  0x20   :  { %v46_v51 = vadd.f32 %v45_v49, %v44_v47  ;;  %v14_v49 = vld [vmem:[%s301_s1] sm:$0xff] }
  0x21   :  { %v134_v52 = vadd.f32 %v133_v50, %v132_v48 }
  0x22   :  { %v47_v53 = vrot.slane %v46_v51, 1 }
  0x23   :  { %v135_v54 = vrot.slane %v134_v52, 1 }
  0x24   :  { %v48_v55 = vadd.f32 %v47_v53, %v46_v51 }
  0x25   :  { %v136_v56 = vadd.f32 %v135_v54, %v134_v52 }
  0x26   :  { %v49_v57 = vmul.f32 %v48_v55, %v34_v27 }
  0x27   :  { %v137_v58 = vmul.f32 %v136_v56, %v34_v27 }
  0x28   :  { %v50_v59 = vadd.f32 1e-05, %v49_v57 }
  0x29   :  { %v138_v60 = vadd.f32 1e-05, %v137_v58 }
  0x2a   :  { %205 = vrsqrt.f32 %v50_v59  ;;  %vm58_vm2 = vcmp.eq.f32.partialorder %v50_v59, inf  ;;  %v61_v10 = vand.u32 2147483648, %v50_v59  ;;  %vm60_vm3 = vcmp.eq.f32.partialorder %v50_v59, 0.0 }
  0x2b   :  { %207 = vrsqrt.f32 %v138_v60  ;;  %vm146_vm4 = vcmp.eq.f32.partialorder %v138_v60, inf  ;;  %v149_v14 = vand.u32 2147483648, %v138_v60  ;;  %vm148_vm5 = vcmp.eq.f32.partialorder %v138_v60, 0.0 }
  0x30   :  { %v206_v61 = vpop.eup %205 }
  0x31   :  { %v208_v62 = vpop.eup %207  ;;  %v52_v63 = vmul.f32 %v206_v61, %v50_v59 }
  0x32   :  { %v140_v0 = vmul.f32 %v208_v62, %v138_v60 }
  0x33   :  { %v53_v1 = vmul.f32 %v206_v61, %v52_v63 }
  0x34   :  { %v141_v2 = vmul.f32 %v208_v62, %v140_v0 }
  0x35   :  { %v54_v3 = vmul.f32 0.5, %v53_v1 }
  0x36   :  { %v142_v4 = vmul.f32 0.5, %v141_v2 }
  0x37   :  { %v55_v5 = vsub.f32 1.5, %v54_v3 }
  0x38   :  { %v143_v7 = vsub.f32 1.5, %v142_v4 }
  0x39   :  { %v56_v9 = vmul.f32 %v206_v61, %v55_v5 }
  0x3a   :  { %v144_v11 = vmul.f32 %v208_v62, %v143_v7 }
  0x3b   :  { %v57_v12 = vmul.f32 %v56_v9, %v50_v59 }
  0x3c   :  { %v145_v13 = vmul.f32 %v144_v11, %v138_v60 }
  0x3d   :  { %v59_v15 = vsel %vm58_vm2, %v50_v59, %v57_v12 }
  0x3e   :  { %v62_v16 = vsel %vm60_vm3, %v61_v10, %v59_v15  ;;  %v147_v17 = vsel %vm146_vm4, %v138_v60, %v145_v13 }
  0x3f   :  { %209 = vrcp.f32 %v62_v16  ;;  %v150_v18 = vsel %vm148_vm5, %v149_v14, %v147_v17  ;;  %vm68_vm6 = vweird.f32 %v62_v16  ;;  %v74_v22 = vand.u32 2147483648, %v62_v16 }
  0x40   :  { %211 = vrcp.f32 %v150_v18  ;;  %v72_v24 = vand.u32 2147483647, %v62_v16  ;;  %vm156_vm8 = vweird.f32 %v150_v18  ;;  %v162_v26 = vand.u32 2147483648, %v150_v18 }
  0x41   :  { %v160_v35 = vand.u32 2147483647, %v150_v18  ;;  %v75_v36 = vor.u32 1.1754944e-38, %v74_v22 }
  0x42   :  { %vm73_vm11 = vcmp.eq.f32.partialorder %v72_v24, 8.507059e+37  ;;  %v163_v39 = vor.u32 1.1754944e-38, %v162_v26 }
  0x43   :  { %vm161_vm13 = vcmp.eq.f32.partialorder %v160_v35, 8.507059e+37 }
  0x45   :  { %v210_v19 = vpop.eup %209 }
  0x46   :  { %v64_v20 = vmul.f32 %v210_v19, %v62_v16  ;;  %v212_v21 = vpop.eup %211  ;;  %vm69_vm7 = vweird.f32 %v210_v19 }
  0x47   :  { %v152_v25 = vmul.f32 %v212_v21, %v150_v18  ;;  %vm157_vm9 = vweird.f32 %v212_v21  ;;  %vm70_vm10 = vmor %vm68_vm6, %vm69_vm7 }
  0x48   :  { %v65_v23 = vsub.f32 1.0, %v64_v20  ;;  %vm158_vm12 = vmor %vm156_vm8, %vm157_vm9 }
  0x49   :  { %v153_v28 = vsub.f32 1.0, %v152_v25 }
  0x4a   :  { %v66_v27 = vmul.f32 %v210_v19, %v65_v23 }
  0x4b   :  { %v154_v38 = vmul.f32 %v212_v21, %v153_v28 }
  0x4c   :  { %v67_v37 = vadd.f32 %v210_v19, %v66_v27 }
  0x4d   :  { %v155_v41 = vadd.f32 %v212_v21, %v154_v38 }
  0x4e   :  { %v71_v40 = vsel %vm70_vm10, %v210_v19, %v67_v37 }
  0x4f   :  { %v76_v42 = vsel %vm73_vm11, %v75_v36, %v71_v40  ;;  %v159_v44 = vsel %vm158_vm12, %v212_v21, %v155_v41 }
  0x50   :  { %v78_v43 = vmul.f32 %v76_v42, %v259_v32  ;;  %v77_v45 = vmul.f32 %v76_v42, %v256_v31  ;;  %v164_v46 = vsel %vm161_vm13, %v163_v39, %v159_v44 }
  0x51   :  { %v166_v47 = vmul.f32 %v164_v46, %v265_v34  ;;  %v165_v48 = vmul.f32 %v164_v46, %v262_v33 }
  0x52   :  { %102 = vmatpush.msra.mxu0 %v78_v43 }
  0x53   :  { %181 = vmatpush.msra.mxu1 %v166_v47 }
  0x54   :  { %103 = vmatpush.msra.mxu0 %v77_v45 }
  0x55   :  { %195 = vmatmul.msk.f32.vlgmr.msra.gmra.mxu0 %vm84_vm14, %v14_v49  ;;  %182 = vmatpush.msra.mxu1 %v165_v48 }
  0x56   :  { %198 = vmatmul.msk.f32.vlgmr.msra.gmra.mxu1 %vm84_vm14, %v14_v49 }
  0x87   :  { %v82_v32 = vpop.permute.xlu0 %81 }
  0xd2   :  { %v105_v50 = vpop.f32.mrf.mxu0 }
  0xd3   :  { %v106_v51 = vadd.f32 %v105_v50, %v82_v32  ;;  %v184_v31 = vpop.f32.mrf.mxu1 }
  0xd4   :  { %v185_v53 = vadd.f32 %v184_v31, %v82_v32 }
  0xd5   :  { %v108_v52 = vmul.f32 %v106_v51, %v62_v16 }
  0xd6   :  { %v187_v54 = vmul.f32 %v185_v53, %v150_v18 }
  0xd7   :  { %v109_v34 = vadd.f32 %v108_v52, %v251_v29 }
  0xd8   :  { %v188_v33 = vadd.f32 %v187_v54, %v253_v30 }
  0xd9   :  { %110 = vst.msk [vmem:[%s302_s3] sm:$0xff] %vm18_vm0, %v109_v34 }
  0xda   :  { %199 = vst.msk [vmem:[%s302_s3 + $0x8] sm:$0xff] %vm18_vm0, %v188_v33 }

</bundles_post_ra>
